<compile_context>
chip_gen: v7x
topology: tpu7x:2x2x1
jax: 0.10.0
libtpu: 0.0.40
codegen_flags: <defaults>
</compile_context>

<pallas_src>
import jax
import jax.numpy as jnp
from jax.experimental import pallas as pl
from jax.experimental.pallas import tpu as pltpu

BN_EPS = 1e-5


def _round_up(x, m):
    return (x + m - 1) // m * m


# --------------------------------------------------------------------------- kernel A
def _matmul_stats_kernel(x_ref, w_ref, y_ref, stats_ref):
    """grid = (n_tiles_N, n_tiles_K).  Accumulate y_tile = x_tile @ W_tile directly in the
    resident f32 output block; on the last K step also emit per-column sum / sum-of-squares
    (rows 0 / 1 of an (8, Hp) stats slab) so batch statistics stay global across N tiles."""
    k = pl.program_id(1)

    @pl.when(k == 0)
    def _():
        y_ref[...] = jnp.zeros_like(y_ref)

    y_ref[...] += jnp.dot(x_ref[...], w_ref[...], preferred_element_type=jnp.float32)

    @pl.when(k == pl.num_programs(1) - 1)
    def _():
        y = y_ref[...]
        hp = y.shape[1]
        col_sum = jnp.sum(y, axis=0, keepdims=True)          # (1, Hp)
        col_sumsq = jnp.sum(y * y, axis=0, keepdims=True)    # (1, Hp)
        row = jax.lax.broadcasted_iota(jnp.int32, (8, hp), 0)
        payload = jnp.where(row == 0, col_sum,
                            jnp.where(row == 1, col_sumsq, 0.0))
        stats_ref[...] = payload[None]                       # (1, 8, Hp)


# --------------------------------------------------------------------------- kernel B
def _bn_apply_kernel(y_ref, scale_ref, shift_ref, o_ref):
    # Folded BatchNorm epilogue: o = y * scale + shift  (2 VPU ops / element).
    o_ref[...] = (y_ref[...] * scale_ref[...] + shift_ref[...]).astype(o_ref.dtype)


# --------------------------------------------------------------------------- wrapper
def feature_block(x, w, gamma, beta, *, eps=BN_EPS):
    """x: (N, D_in) f32; w: (D_in, H) f32 (Linear weight pre-transposed);
    gamma/beta: (1, H) f32.  Returns (N, H) f32 = BatchNorm1d(Linear(x)) with
    training-mode (biased) batch statistics.  Bias-free Linear: a bias before
    batch-axis BN is mathematically a no-op."""
    N, D = x.shape
    H = w.shape[1]

    # Lane/sublane-dense padded geometry.
    TM = min(256, _round_up(N, 8))                 # rows per N tile
    N_p = _round_up(N, TM)
    D_p = _round_up(D, 128)
    H_p = _round_up(H, 128)                        # lane-dense output width
    TK = next(t for t in (512, 256, 128) if D_p % t == 0)
    n_n, n_k = N_p // TM, D_p // TK

    f32 = jnp.float32
    x_p = jnp.pad(x.astype(f32), ((0, N_p - N), (0, D_p - D)))
    w_p = jnp.pad(w.astype(f32), ((0, D_p - D), (0, H_p - H)))
    gamma_p = jnp.pad(gamma.astype(f32), ((0, 0), (0, H_p - H)))
    beta_p = jnp.pad(beta.astype(f32), ((0, 0), (0, H_p - H)))

    itemsize = 4
    vmem_a = 2 * (TM * TK + TK * H_p + TM * H_p + 8 * H_p) * itemsize
    y_p, partials = pl.pallas_call(
        _matmul_stats_kernel,
        out_shape=(jax.ShapeDtypeStruct((N_p, H_p), f32),
                   jax.ShapeDtypeStruct((n_n, 8, H_p), f32)),
        grid_spec=pltpu.PrefetchScalarGridSpec(
            num_scalar_prefetch=0,
            grid=(n_n, n_k),
            in_specs=[
                pl.BlockSpec((TM, TK), lambda i, k: (i, k)),
                pl.BlockSpec((TK, H_p), lambda i, k: (k, 0)),
            ],
            out_specs=(
                pl.BlockSpec((TM, H_p), lambda i, k: (i, 0)),
                pl.BlockSpec((1, 8, H_p), lambda i, k: (i, 0, 0)),
            ),
        ),
        compiler_params=pltpu.CompilerParams(
            dimension_semantics=("parallel", "arbitrary"),
            vmem_limit_bytes=int(max(2 * vmem_a, 16 * 2**20)),
        ),
        cost_estimate=pl.CostEstimate(
            flops=2 * N_p * D_p * H_p,
            transcendentals=0,
            bytes_accessed=itemsize * (N_p * D_p + n_n * D_p * H_p
                                       + N_p * H_p + n_n * 8 * H_p),
        ),
    )(x_p, w_p)

    # Finalize global batch stats -> folded scale / shift (tiny, H-wide work).
    ssum = jnp.sum(partials[:, 0, :], axis=0)                  # (H_p,)
    ssq = jnp.sum(partials[:, 1, :], axis=0)                   # (H_p,)
    inv_n = 1.0 / N                                            # padded rows are zero
    mean = ssum * inv_n
    var = jnp.maximum(ssq * inv_n - mean * mean, 0.0)          # biased (training-mode) var
    scale = gamma_p[0] * jax.lax.rsqrt(var + eps)              # (H_p,)
    shift = beta_p[0] - mean * scale
    scale = scale[None, :]
    shift = shift[None, :]

    vmem_b = 2 * (2 * TM * H_p + 2 * H_p) * itemsize
    out_p = pl.pallas_call(
        _bn_apply_kernel,
        out_shape=jax.ShapeDtypeStruct((N_p, H_p), f32),
        grid=(n_n,),
        in_specs=[
            pl.BlockSpec((TM, H_p), lambda i: (i, 0)),
            pl.BlockSpec((1, H_p), lambda i: (0, 0)),   # stays resident across N tiles
            pl.BlockSpec((1, H_p), lambda i: (0, 0)),
        ],
        out_specs=pl.BlockSpec((TM, H_p), lambda i: (i, 0)),
        compiler_params=pltpu.CompilerParams(
            dimension_semantics=("parallel",),
            vmem_limit_bytes=int(max(2 * vmem_b, 16 * 2**20)),
        ),
    )(y_p, scale, shift)

    return out_p[:N, :H]


# --------------------------------------------------------------------------- init / ref
def init_params(key, input_dim, hidden_dim):
    """weights_init_kaiming: Linear kaiming_normal_(fan_out) weight (bias dropped — it
    cancels under the following BatchNorm); BN weight ~ N(1.0, 0.01), zero bias."""
    k_w, k_g = jax.random.split(key)
    std = (2.0 / hidden_dim) ** 0.5                  # fan_out = hidden_dim
    w_torch = std * jax.random.normal(k_w, (hidden_dim, input_dim), jnp.float32)
    w = w_torch.T                                    # stored (D_in, H) for x @ W
    gamma = 1.0 + 0.01 * jax.random.normal(k_g, (1, hidden_dim), jnp.float32)
    beta = jnp.zeros((1, hidden_dim), jnp.float32)
    return w, gamma, beta


def feature_block_ref(x, w, gamma, beta, eps=BN_EPS):
    y = x @ w
    mean = jnp.mean(y, axis=0, keepdims=True)
    var = jnp.mean((y - mean) ** 2, axis=0, keepdims=True)
    return (y - mean) * jax.lax.rsqrt(var + eps) * gamma + beta


# --------------------------------------------------------------------------- main
if __name__ == "__main__":
    key = jax.random.PRNGKey(0)
    k_x, k_p, k_x2, k_p2 = jax.random.split(key, 4)

    # Tolerance covers possible MXU f32-pass differences vs XLA's default matmul;
    # structural bugs (wrong stats / tiling / padding) would show up as O(1) errors.
    ATOL = RTOL = 1e-2

    # Small shape consistent with the module head (batch=8, in=32, hidden=32).
    N, D_IN, HID = 8, 32, 32
    x = jax.random.normal(k_x, (N, D_IN), jnp.float32)
    w, gamma, beta = init_params(k_p, D_IN, HID)
    out = jax.block_until_ready(feature_block(x, w, gamma, beta))
    ref = feature_block_ref(x, w, gamma, beta)
    assert out.shape == (N, HID)
    assert jnp.allclose(out, ref, atol=ATOL, rtol=RTOL), float(jnp.max(jnp.abs(out - ref)))

    # Ragged shape exercising N tiling (2 tiles), K tiling (5 tiles) and H padding.
    N2, D2, H2 = 300, 520, 200
    x2 = jax.random.normal(k_x2, (N2, D2), jnp.float32)
    w2, g2, b2 = init_params(k_p2, D2, H2)
    out2 = jax.block_until_ready(feature_block(x2, w2, g2, b2))
    ref2 = feature_block_ref(x2, w2, g2, b2)
    assert out2.shape == (N2, H2)
    assert jnp.allclose(out2, ref2, atol=ATOL, rtol=RTOL), float(jnp.max(jnp.abs(out2 - ref2)))

    print("KERNEL_OK")
</pallas_src>

<mosaic_0001>
module attributes {stable_mosaic.version = 11 : i64} {
  func.func @_matmul_stats_kernel(%arg0: i32, %arg1: i32, %arg2: memref<8x128xf32, #tpu.memory_space<vmem>>, %arg3: memref<128x128xf32, #tpu.memory_space<vmem>>, %arg4: memref<8x128xf32, #tpu.memory_space<vmem>>, %arg5: memref<1x8x128xf32, #tpu.memory_space<vmem>>) attributes {dimension_semantics = [#tpu.dimension_semantics<parallel>, #tpu.dimension_semantics<arbitrary>], iteration_bounds = array<i64: 1, 1>, scalar_prefetch = 0 : i64, scratch_operands = 0 : i64, tpu.core_type = #tpu.core_type<tc>, window_params = [{transform_indices = @transform_0, window_bounds = array<i64: 8, 128>}, {transform_indices = @transform_1, window_bounds = array<i64: 128, 128>}, {transform_indices = @transform_2, window_bounds = array<i64: 8, 128>}, {transform_indices = @transform_3, window_bounds = array<i64: 1, 8, 128>}]} {
    %c0_i32 = arith.constant 0 : i32
    %0 = arith.cmpi eq, %arg1, %c0_i32 : i32
    %1 = arith.extui %0 : i1 to i32
    %c0_i32_0 = arith.constant 0 : i32
    %2 = arith.cmpi ne, %1, %c0_i32_0 : i32
    scf.if %2 {
      %cst_10 = arith.constant 0.000000e+00 : f32
      %12 = vector.broadcast %cst_10 : f32 to vector<8x128xf32>
      %c0_11 = arith.constant 0 : index
      %c0_12 = arith.constant 0 : index
      %13 = vector.load %arg4[%c0_11, %c0_12] : memref<8x128xf32, #tpu.memory_space<vmem>>, vector<8x128xf32>
      tpu.vector_store %arg4[%c0_11, %c0_12], %12 {strides = array<i32>} : memref<8x128xf32, #tpu.memory_space<vmem>>, vector<8x128xf32>,
    } else {
    }
    %c0 = arith.constant 0 : index
    %c0_1 = arith.constant 0 : index
    %3 = vector.load %arg4[%c0, %c0_1] : memref<8x128xf32, #tpu.memory_space<vmem>>, vector<8x128xf32>
    %c0_2 = arith.constant 0 : index
    %c0_3 = arith.constant 0 : index
    %4 = vector.load %arg2[%c0_2, %c0_3] : memref<8x128xf32, #tpu.memory_space<vmem>>, vector<8x128xf32>
    %c0_4 = arith.constant 0 : index
    %c0_5 = arith.constant 0 : index
    %5 = vector.load %arg3[%c0_4, %c0_5] : memref<128x128xf32, #tpu.memory_space<vmem>>, vector<128x128xf32>
    %cst = arith.constant dense<0.000000e+00> : vector<8x128xf32>
    %6 = tpu.matmul %4, %5, %cst {dimension_numbers = #tpu.dot_dimension_numbers<[1], [0], [0], [1], [0, 0, 1, 1], [], []>} : vector<8x128xf32>, vector<128x128xf32>, vector<8x128xf32> -> vector<8x128xf32>
    %7 = arith.addf %3, %6 : vector<8x128xf32>
    %c0_6 = arith.constant 0 : index
    %c0_7 = arith.constant 0 : index
    %8 = vector.load %arg4[%c0_6, %c0_7] : memref<8x128xf32, #tpu.memory_space<vmem>>, vector<8x128xf32>
    tpu.vector_store %arg4[%c0_6, %c0_7], %7 {strides = array<i32>} : memref<8x128xf32, #tpu.memory_space<vmem>>, vector<8x128xf32>,
    %c0_i32_8 = arith.constant 0 : i32
    %9 = arith.cmpi eq, %arg1, %c0_i32_8 : i32
    %10 = arith.extui %9 : i1 to i32
    %c0_i32_9 = arith.constant 0 : i32
    %11 = arith.cmpi ne, %10, %c0_i32_9 : i32
    scf.if %11 {
      %c0_10 = arith.constant 0 : index
      %c0_11 = arith.constant 0 : index
      %12 = vector.load %arg4[%c0_10, %c0_11] : memref<8x128xf32, #tpu.memory_space<vmem>>, vector<8x128xf32>
      %cst_12 = arith.constant dense<0.000000e+00> : vector<128xf32>
      %13 = vector.multi_reduction <add>, %12, %cst_12 [0] : vector<8x128xf32> to vector<128xf32>
      %14 = vector.shape_cast %13 : vector<128xf32> to vector<1x128xf32>
      %15 = arith.mulf %12, %12 : vector<8x128xf32>
      %cst_13 = arith.constant dense<0.000000e+00> : vector<128xf32>
      %16 = vector.multi_reduction <add>, %15, %cst_13 [0] : vector<8x128xf32> to vector<128xf32>
      %17 = vector.shape_cast %16 : vector<128xf32> to vector<1x128xf32>
      %18 = tpu.iota {dimensions = array<i32: 0>} : vector<8x128xi32>
      %c0_i32_14 = arith.constant 0 : i32
      %19 = vector.broadcast %c0_i32_14 : i32 to vector<8x128xi32>
      %20 = arith.cmpi eq, %18, %19 : vector<8x128xi32>
      %c1_i32 = arith.constant 1 : i32
      %21 = vector.broadcast %c1_i32 : i32 to vector<8x128xi32>
      %22 = arith.cmpi eq, %18, %21 : vector<8x128xi32>
      %cst_15 = arith.constant 0.000000e+00 : f32
      %23 = vector.shape_cast %17 : vector<1x128xf32> to vector<1x128xf32>
      %24 = vector.broadcast %23 : vector<1x128xf32> to vector<8x128xf32>
      %25 = vector.broadcast %cst_15 : f32 to vector<8x128xf32>
      %26 = arith.select %22, %24, %25 : vector<8x128xi1>, vector<8x128xf32>
      %27 = vector.shape_cast %14 : vector<1x128xf32> to vector<1x128xf32>
      %28 = vector.broadcast %27 : vector<1x128xf32> to vector<8x128xf32>
      %29 = arith.select %20, %28, %26 : vector<8x128xi1>, vector<8x128xf32>
      %30 = vector.shape_cast %29 : vector<8x128xf32> to vector<1x8x128xf32>
      %c0_16 = arith.constant 0 : index
      %c0_17 = arith.constant 0 : index
      %c0_18 = arith.constant 0 : index
      %31 = vector.load %arg5[%c0_16, %c0_17, %c0_18] : memref<1x8x128xf32, #tpu.memory_space<vmem>>, vector<1x8x128xf32>
      tpu.vector_store %arg5[%c0_16, %c0_17, %c0_18], %30 {strides = array<i32>} : memref<1x8x128xf32, #tpu.memory_space<vmem>>, vector<1x8x128xf32>,
    } else {
    }
    return
  }
  func.func @transform_0(%arg0: i32, %arg1: i32) -> (i32, i32) {
    %c0_i32 = arith.constant 0 : i32
    return %arg0, %arg1 : i32, i32
  }
  func.func @transform_1(%arg0: i32, %arg1: i32) -> (i32, i32) {
    %c0_i32 = arith.constant 0 : i32
    %c0_i32_0 = arith.constant 0 : i32
    return %arg1, %c0_i32 : i32, i32
  }
  func.func @transform_2(%arg0: i32, %arg1: i32) -> (i32, i32) {
    %c0_i32 = arith.constant 0 : i32
    %c0_i32_0 = arith.constant 0 : i32
    return %arg0, %c0_i32 : i32, i32
  }
  func.func @transform_3(%arg0: i32, %arg1: i32) -> (i32, i32, i32) {
    %c0_i32 = arith.constant 0 : i32
    %c0_i32_0 = arith.constant 0 : i32
    %c0_i32_1 = arith.constant 0 : i32
    return %arg0, %c0_i32, %c0_i32_0 : i32, i32, i32
  }
}

</mosaic_0001>

<bundles_post_ra>
// kernel: tpu_custom_call.1
= control target key start
LH: loop header
LB: loop body
LE: loop exit
PB: predicated region body
PF: predicated region fallthrough
CT: control target
= control target key end

     0   :  { %9 = vsyncpa [#allocation3], 0  ;;  %s455_s0 = inlined_call_operand.hbm [shape: f32[8,128], index: 0, kind: input, shape index: {}]   ;;  %s456_s1 = inlined_call_operand.hbm [shape: f32[128,128], index: 1, kind: input, shape index: {}]   ;;  %s457_s2 = inlined_call_operand.hbm [shape: f32[8,128], index: 2, kind: output, shape index: {0}]   ;;  %s458_s3 = inlined_call_operand.hbm [shape: f32[1,8,128], index: 3, kind: output, shape index: {1}]  }
   0x1   :  { %10 = vsyncpa [#allocation6], 0 }
   0x2   :  { %11 = vsyncpa [#allocation4], 0 }
   0x3   :  { %12 = vsyncpa [#allocation9], 0  ;;  %s371_s12 = smov [#allocation2]   ;;  %s372_s14 = smov [#allocation5]  }
   0x4   :  { %s19_s13 = sshll.u32 %s371_s12, 4  ;;  %s28_s15 = sshll.u32 %s372_s14, 4  ;;  %s20_s13 = int_to_ptr.vmem [resolvable:$true] %s19_s13  ;;  %s400_s15 = int_to_ptr.vmem [resolvable:$true] %s28_s15 }
   0x5   :  { %s275_s18 = scalar_lea.hbm %s455_s0, 128 }
   0x6   :  { %p276_p0 = scmp.ne.s32.totalorder %s455_s0, %s275_s18  ;;  %p279_p1 = scmp.lt.u32.totalorder %s275_s18, %s455_s0 }
   0x8   :  { %p281_p2 = pnand %p279_p1, %p276_p0 }
   0xa   :  { %284 = shalt.err (!%p281_p2)
}
   0xb   :  { %s285_s23 = scalar_lea.vmem %s20_s13, 128  ;;  %p290_p4 = scmp.lt.s32.totalorder %s20_s13, %s20_s13 }
   0xc   :  { %p286_p3 = scmp.ne.s32.totalorder %s20_s13, %s285_s23  ;;  %p291_p5 = scmp.lt.s32.totalorder %s285_s23, %s285_s23 }
   0xe   :  { %p292_p6 = por %p291_p5, %p290_p4 }
  0x10   :  { %p293_p7 = pnand %p292_p6, %p286_p3 }
  0x12   :  { %296 = shalt.err (!%p293_p7)
}
  0x13   :  { %22 = dma.hbm_to_vmem [thread:$0]  %s455_s0, 128, %s20_s13, [#allocation3]  }
  0x14   :  { %s297_s28 = scalar_lea.hbm %s456_s1, 2048 }
  0x15   :  { %p298_p8 = scmp.ne.s32.totalorder %s456_s1, %s297_s28  ;;  %p301_p9 = scmp.lt.u32.totalorder %s297_s28, %s456_s1 }
  0x17   :  { %p303_p10 = pnand %p301_p9, %p298_p8 }
  0x19   :  { %306 = shalt.err (!%p303_p10)
}
  0x1a   :  { %s307_s6 = scalar_lea.vmem %s400_s15, 2048  ;;  %p312_p12 = scmp.lt.s32.totalorder %s400_s15, %s400_s15 }
  0x1b   :  { %p308_p11 = scmp.ne.s32.totalorder %s400_s15, %s307_s6  ;;  %p313_p13 = scmp.lt.s32.totalorder %s307_s6, %s307_s6 }
  0x1d   :  { %p314_p0 = por %p313_p13, %p312_p12 }
  0x1f   :  { %p315_p1 = pnand %p314_p0, %p308_p11 }
  0x21   :  { %318 = shalt.err (!%p315_p1)
}
  0x22   :  { %s373_s0 = smov 128   ;;  %s374_s7 = smov 8  }
  0x23   :  { %34 = dma.hbm_to_vmem [thread:$0]  %s456_s1, 2048, %s400_s15, [#allocation6], %s373_s0, %s373_s0, %s374_s7  }
  0x24   :  { %363 = dma.done.wait [#allocation3], 128  }
  0x25   :  { %364 = vsyncadd [#allocation3], 4294967168 }
  0x26   :  { %365 = dma.done.wait [#allocation6], 2048  }
  0x27   :  { %366 = vsyncadd [#allocation6], 4294965248  ;;  %v375_v0 = vmov 0.0|0.0   ;;  %vm376_vm0 = vmmov 0   ;;  %v377_v1 = vmov 0.0   ;;  %v48_v2 = vld [vmem:[#allocation5] sm:$0xff] }
  0x28   :  { %242 = vmatprep.subr.bf16.mxu0 %v375_v0  ;;  %239 = vmatprep.mubr.msk.f32.mxu0 %vm376_vm0, %v377_v1  ;;  %v49_v3 = vld [vmem:[#allocation5 + $0x8] sm:$0xff]  ;;  %v50_v4 = vld [vmem:[#allocation5 + $0x10] sm:$0xff]  ;;  %v51_v6 = vld [vmem:[#allocation5 + $0x18] sm:$0xff]  ;;  %s378_s1 = smov [#allocation7]  }
  0x29   :  { %v243_v5 = vpack.c.bf16 %v49_v3, %v48_v2  ;;  %v246_v7 = vpack.c.bf16 %v51_v6, %v50_v4  ;;  %v52_v8 = vld [vmem:[#allocation5 + $0x20] sm:$0xff]  ;;  %v53_v9 = vld [vmem:[#allocation5 + $0x28] sm:$0xff]  ;;  %v54_v11 = vld [vmem:[#allocation5 + $0x30] sm:$0xff]  ;;  %s166_s10 = sshll.u32 %s378_s1, 4  ;;  %s167_s10 = int_to_ptr.vmem [resolvable:$true] %s166_s10 }
  0x2a   :  { %v249_v10 = vpack.c.bf16 %v53_v9, %v52_v8  ;;  %v55_v12 = vld [vmem:[#allocation5 + $0x38] sm:$0xff]  ;;  %v56_v14 = vld [vmem:[#allocation5 + $0x40] sm:$0xff]  ;;  %v57_v15 = vld [vmem:[#allocation5 + $0x48] sm:$0xff]  ;;  %s319_s11 = scalar_lea.vmem %s167_s10, 128  ;;  %p324_p3 = scmp.lt.s32.totalorder %s167_s10, %s167_s10 }
  0x2b   :  { %244 = vmatpush3.bf16.msra.mxu0 %v243_v5  ;;  %v252_v13 = vpack.c.bf16 %v55_v12, %v54_v11  ;;  %v255_v16 = vpack.c.bf16 %v57_v15, %v56_v14  ;;  %v58_v17 = vld [vmem:[#allocation5 + $0x50] sm:$0xff]  ;;  %v59_v18 = vld [vmem:[#allocation5 + $0x58] sm:$0xff]  ;;  %v60_v20 = vld [vmem:[#allocation5 + $0x60] sm:$0xff]  ;;  %p320_p2 = scmp.ne.s32.totalorder %s167_s10, %s319_s11  ;;  %p325_p4 = scmp.lt.s32.totalorder %s319_s11, %s319_s11 }
  0x2c   :  { %245 = vmatprep.subr.bf16.mxu0 %v375_v0  ;;  %v258_v19 = vpack.c.bf16 %v59_v18, %v58_v17  ;;  %v61_v21 = vld [vmem:[#allocation5 + $0x68] sm:$0xff]  ;;  %v62_v23 = vld [vmem:[#allocation5 + $0x70] sm:$0xff]  ;;  %v63_v24 = vld [vmem:[#allocation5 + $0x78] sm:$0xff] }
  0x2d   :  { %v261_v22 = vpack.c.bf16 %v61_v21, %v60_v20  ;;  %v264_v25 = vpack.c.bf16 %v63_v24, %v62_v23  ;;  %v47_v26 = vld [vmem:[#allocation2] sm:$0xff]  ;;  %p326_p5 = por %p325_p4, %p324_p3 }
  0x2f   :  { %247 = vmatpush3.bf16.msra.mxu0 %v246_v7  ;;  %p327_p6 = pnand %p326_p5, %p320_p2 }
  0x30   :  { %248 = vmatprep.subr.bf16.mxu0 %v375_v0 }
  0x33   :  { %250 = vmatpush3.bf16.msra.mxu0 %v249_v10 }
  0x34   :  { %251 = vmatprep.subr.bf16.mxu0 %v375_v0 }
  0x37   :  { %253 = vmatpush3.bf16.msra.mxu0 %v252_v13 }
  0x38   :  { %254 = vmatprep.subr.bf16.mxu0 %v375_v0 }
  0x3b   :  { %256 = vmatpush3.bf16.msra.mxu0 %v255_v16 }
  0x3c   :  { %257 = vmatprep.subr.bf16.mxu0 %v375_v0 }
  0x3f   :  { %259 = vmatpush3.bf16.msra.mxu0 %v258_v19 }
  0x40   :  { %260 = vmatprep.subr.bf16.mxu0 %v375_v0 }
  0x43   :  { %262 = vmatpush3.bf16.msra.mxu0 %v261_v22 }
  0x44   :  { %263 = vmatprep.subr.bf16.mxu0 %v375_v0 }
  0x47   :  { %265 = vmatpush3.bf16.msra.mxu0 %v264_v25 }
  0x4a   :  { %240 = vmatmul.mubr.f32.vlgmr.msra.gmra.mrb[0].mxu0 %v47_v26 }
 0x11d   :  { %v130_v27 = vpop.f32.mrb[0].mxu0 }
 0x11e   :  { %v241_v28 = vpop.f32.mrb[1].mxu0  ;;  %135 = vst [vmem:[#allocation7] sm:$0xff] %v130_v27 }
 0x11f   :  { %330 = shalt.err (!%p327_p6)
}
 0x120   :  { %s331_s14 = scalar_lea.hbm %s457_s2, 128 }
 0x121   :  { %p332_p7 = scmp.ne.s32.totalorder %s457_s2, %s331_s14  ;;  %p335_p8 = scmp.lt.u32.totalorder %s331_s14, %s457_s2 }
 0x123   :  { %p337_p9 = pnand %p335_p8, %p332_p7 }
 0x125   :  { %340 = shalt.err (!%p337_p9)
}
 0x126   :  { %169 = dma.vmem_to_hbm [thread:$0]  %s167_s10, 128, %s457_s2, [#allocation4]   ;;  %v139_v29 = vld [vmem:[#allocation7] sm:$0xff]  ;;  %v153_v34 = vlaneseq }
 0x127   :  { %v140_v30 = vrot.slane %v139_v29, 4  ;;  %v146_v31 = vmul.f32 %v139_v29, %v139_v29  ;;  %s379_s21 = smov [#allocation8]  }
 0x128   :  { %v154_v39 = vshrl.u32 %v153_v34, 7  ;;  %s176_s22 = sshll.u32 %s379_s21, 4  ;;  %s177_s22 = int_to_ptr.vmem [resolvable:$true] %s176_s22 }
 0x129   :  { %v141_v32 = vadd.f32 %v140_v30, %v139_v29  ;;  %v147_v33 = vrot.slane %v146_v31, 4  ;;  %s341_s2 = scalar_lea.vmem %s177_s22, 128  ;;  %p346_p11 = scmp.lt.s32.totalorder %s177_s22, %s177_s22 }
 0x12a   :  { %vm156_vm1 = vcmp.eq.s32.totalorder %v154_v39, 1  ;;  %vm155_vm2 = vcmp.eq.s32.totalorder %v154_v39, 0  ;;  %p342_p10 = scmp.ne.s32.totalorder %s177_s22, %s341_s2  ;;  %p347_p12 = scmp.lt.s32.totalorder %s341_s2, %s341_s2 }
 0x12b   :  { %v142_v35 = vrot.slane %v141_v32, 2  ;;  %v148_v36 = vadd.f32 %v147_v33, %v146_v31 }
 0x12c   :  { %p348_p13 = por %p347_p12, %p346_p11 }
 0x12d   :  { %v143_v37 = vadd.f32 %v142_v35, %v141_v32  ;;  %v149_v38 = vrot.slane %v148_v36, 2 }
 0x12e   :  { %p349_p0 = pnand %p348_p13, %p342_p10 }
 0x12f   :  { %v150_v40 = vadd.f32 %v149_v38, %v148_v36  ;;  %v144_v41 = vrot.slane %v143_v37, 1 }
 0x131   :  { %v151_v42 = vrot.slane %v150_v40, 1  ;;  %v145_v44 = vadd.f32 %v144_v41, %v143_v37 }
 0x133   :  { %v152_v43 = vadd.f32 %v151_v42, %v150_v40 }
 0x135   :  { %v157_v45 = vsel %vm156_vm1, %v152_v43, 0.0 }
 0x136   :  { %v158_v46 = vsel %vm155_vm2, %v145_v44, %v157_v45 }
 0x137   :  { %159 = vst [vmem:[#allocation8] sm:$0xff] %v158_v46 }
 0x138   :  { %352 = shalt.err (!%p349_p0)
}
 0x139   :  { %s353_s25 = scalar_lea.hbm %s458_s3, 128 }
 0x13a   :  { %p354_p1 = scmp.ne.s32.totalorder %s458_s3, %s353_s25  ;;  %p357_p2 = scmp.lt.u32.totalorder %s353_s25, %s458_s3 }
 0x13c   :  { %p359_p3 = pnand %p357_p2, %p354_p1 }
 0x13e   :  { %362 = shalt.err (!%p359_p3)
}
 0x13f   :  { %179 = dma.vmem_to_hbm [thread:$0]  %s177_s22, 128, %s458_s3, [#allocation9]  }
 0x140   :  { %367 = dma.done.wait [#allocation4], 128  }
 0x141   :  { %368 = vsyncadd [#allocation4], 4294967168 }
 0x142   :  { %369 = dma.done.wait [#allocation9], 128  }
 0x143   :  { %370 = vsyncadd [#allocation9], 4294967168 }
 0x144   :  { %186 = vsyncpa [#allocation3], 1 }
 0x145   :  { %187 = vsyncpa [#allocation6], 1 }
 0x146   :  { %188 = vsyncpa [#allocation4], 1 }
 0x147   :  { %189 = vsyncpa [#allocation9], 1 }

</bundles_post_ra>
